<compile_context>
chip_gen: v6e
topology: v6e:2x2x1
jax: 0.10.0
libtpu: 0.0.40
codegen_flags: <defaults>
</compile_context>

<pallas_src>
import functools

import jax
import jax.numpy as jnp
from jax import lax
from jax.experimental import pallas as pl
from jax.experimental.pallas import tpu as pltpu


# --- nn.Module hyper-parameters: Cutout(n_holes=4, length=0.25, fill=0.0) ---
N_HOLES_PARAM = 4
MAX_LENGTH = 0.25
FILL = 0.0                       # constant fill
MAX_HOLES = N_HOLES_PARAM + 1    # torch.randint(0, max_holes) -> n_holes in [0, 4]
MAX_RECTS = MAX_HOLES - 1        # at most 4 rectangles ever get cut
_RECT_STRIDE = 8                 # int32 fields per rectangle in the SMEM table
_SLAB_BUDGET_BYTES = 4 * 1024 * 1024   # VMEM bounce-buffer budget (hole path)
# TODO(synk): the fill='random' branch (torch.rand_like blend) is not implemented;
#             only the default constant-fill path of the module is covered.


# --------------------------------------------------------------------------- #
# Small static helpers
# --------------------------------------------------------------------------- #
def _sublane_unit(dtype):
    # dtype-correct sublane packing: 8 rows for 32-bit, 16 for bf16, 32 for int8/fp8.
    return {4: 8, 2: 16, 1: 32}[jnp.dtype(dtype).itemsize]


def _round_up(x, m):
    return ((x + m - 1) // m) * m


def _pick_tile(extent, unit, max_tile):
    """Largest tile <= max_tile that is a multiple of `unit` and divides `extent`.
    Falls back to the full extent (always legal for a BlockSpec)."""
    if extent <= max_tile:
        return extent
    t = (max_tile // unit) * unit
    while t >= unit:
        if extent % t == 0:
            return t
        t -= unit
    return extent


def _block_budget():
    """(target block bytes, vmem_limit_bytes) for the streaming fallback,
    derived from this generation's VMEM capacity (v7x: 64 MiB/TC, else 128 MiB)."""
    try:
        cap = pltpu.get_tpu_info().vmem_capacity_bytes
    except Exception:
        cap = 128 * 1024 * 1024
    if cap <= 64 * 1024 * 1024:
        # v7x-class: less VMEM but ~3.2 TB/s HBM -> 8 MiB blocks, modest scoped limit.
        return 8 * 1024 * 1024, 44 * 1024 * 1024
    # v5e / v6e: 128 MiB VMEM -> 16 MiB blocks amortize the per-step overhead.
    return 16 * 1024 * 1024, 96 * 1024 * 1024


# --------------------------------------------------------------------------- #
# Random-rectangle sampling (mirrors torch Cutout.forward semantics)
# --------------------------------------------------------------------------- #
def _sample_rects(key, H, W):
    """Returns per-rect int32 arrays (active, y1, y2, x1, x2), each (MAX_RECTS,)."""
    k1, k2, k3, k4, k5 = jax.random.split(key, 5)
    n_holes = jax.random.randint(k1, (), 0, MAX_HOLES, dtype=jnp.int32)
    length_h = jnp.floor(H * jax.random.uniform(k2, ()) * MAX_LENGTH).astype(jnp.int32)
    length_w = jnp.floor(W * jax.random.uniform(k3, ()) * MAX_LENGTH).astype(jnp.int32)
    ys = jax.random.randint(k4, (MAX_RECTS,), 0, H, dtype=jnp.int32)
    xs = jax.random.randint(k5, (MAX_RECTS,), 0, W, dtype=jnp.int32)
    y1 = jnp.clip(ys - length_h // 2, 0, H)
    y2 = jnp.clip(ys + length_h // 2, 0, H)
    x1 = jnp.clip(xs - length_w // 2, 0, W)
    x2 = jnp.clip(xs + length_w // 2, 0, W)
    active = (jnp.arange(MAX_RECTS) < n_holes).astype(jnp.int32)
    return active, y1, y2, x1, x2


def _keep_mask_from_rects(active, y1, y2, x1, x2, H, W):
    """(H, W) float32 keep-mask (1 = keep, 0 = cut) — reference / fallback path."""
    row = jnp.arange(H)[None, :, None]
    col = jnp.arange(W)[None, None, :]
    in_rect = ((row >= y1[:, None, None]) & (row < y2[:, None, None]) &
               (col >= x1[:, None, None]) & (col < x2[:, None, None]))
    cut = jnp.any(in_rect & (active[:, None, None] > 0), axis=0)
    return jnp.where(cut, 0.0, 1.0).astype(jnp.float32)


# --------------------------------------------------------------------------- #
# Primary path: in-place hole writes (image aliased to output, manual DMA)
# --------------------------------------------------------------------------- #
def _holes_kernel(rect_ref, x_hbm, o_hbm, slab, sems, *, bc_t, slab_h, slab_w):
    """Cut the (<= MAX_RECTS) hole rectangles in place.

    rect_ref : SMEM int32[(MAX_RECTS*_RECT_STRIDE,)]
               per rect: [active, y1, y2, x1, x2, row_start, col_start, pad]
    x_hbm    : (BC, H, W) image in HBM — aliased with o_hbm (unused directly)
    o_hbm    : (BC, H, W) output in HBM (same buffer as the input)
    slab     : VMEM (bc_t, slab_h, slab_w) bounce buffer
    sems     : DMA semaphores, one per rectangle
    """
    del x_hbm  # aliased; all reads/writes go through the output buffer
    bc0 = pl.program_id(0) * bc_t

    for r in range(MAX_RECTS):                       # static unroll (<= 4 rects)
        base = r * _RECT_STRIDE

        @pl.when(rect_ref[base + 0] > 0)
        def _(r=r, base=base):
            y1 = rect_ref[base + 1]
            y2 = rect_ref[base + 2]
            x1 = rect_ref[base + 3]
            x2 = rect_ref[base + 4]
            row0 = rect_ref[base + 5]                # clamped window origin (rows)
            col0 = rect_ref[base + 6]                # clamped window origin (cols)
            window = o_hbm.at[pl.ds(bc0, bc_t), pl.ds(row0, slab_h), pl.ds(col0, slab_w)]

            # Rectangles may overlap, so each read-modify-write is fully ordered:
            # wait on every DMA before issuing the next one.
            cp_in = pltpu.make_async_copy(window, slab, sems.at[r])
            cp_in.start()
            cp_in.wait()

            rows = row0 + lax.broadcasted_iota(jnp.int32, (slab_h, slab_w), 0)
            cols = col0 + lax.broadcasted_iota(jnp.int32, (slab_h, slab_w), 1)
            cut = (rows >= y1) & (rows < y2) & (cols >= x1) & (cols < x2)
            slab[...] = jnp.where(cut[None, :, :],
                                  jnp.asarray(FILL, slab.dtype), slab[...])

            cp_out = pltpu.make_async_copy(slab, window, sems.at[r])
            cp_out.start()
            cp_out.wait()


def _cutout_inplace(img, active, y1, y2, x1, x2):
    B, C, H, W = img.shape
    dtype = img.dtype
    unit = _sublane_unit(dtype)

    # Static slab guaranteed to contain any sampled hole:
    # hole height <= floor(H*MAX_LENGTH), hole width <= floor(W*MAX_LENGTH).
    slab_h = min(H, _round_up(max(int(H * MAX_LENGTH), 1), unit))
    slab_w = min(W, max(int(W * MAX_LENGTH), 1))

    # Clamp window origins so the static-size window stays in bounds; the hole
    # [y1,y2)x[x1,x2) always lies inside [row0,row0+slab_h)x[col0,col0+slab_w).
    row0 = jnp.clip(y1, 0, H - slab_h)
    col0 = jnp.clip(x1, 0, W - slab_w)
    pad = jnp.zeros_like(active)
    rects = jnp.stack([active, y1, y2, x1, x2, row0, col0, pad], axis=1)
    rects = rects.reshape(-1).astype(jnp.int32)      # (MAX_RECTS * _RECT_STRIDE,)

    BC = B * C
    x3 = img.reshape(BC, H, W)

    slab_bytes = slab_h * slab_w * jnp.dtype(dtype).itemsize
    bc_t = _pick_tile(BC, 1, max(1, _SLAB_BUDGET_BYTES // max(slab_bytes, 1)))
    grid = (BC // bc_t,)

    out3 = pl.pallas_call(
        functools.partial(_holes_kernel, bc_t=bc_t, slab_h=slab_h, slab_w=slab_w),
        out_shape=jax.ShapeDtypeStruct((BC, H, W), dtype),
        grid_spec=pltpu.PrefetchScalarGridSpec(
            num_scalar_prefetch=0,
            grid=grid,
            in_specs=[
                pl.BlockSpec(memory_space=pltpu.MemorySpace.SMEM),   # rect table
                pl.BlockSpec(memory_space=pl.ANY),                   # image in HBM
            ],
            out_specs=pl.BlockSpec(memory_space=pl.ANY),             # aliased output
            scratch_shapes=[
                pltpu.VMEM((bc_t, slab_h, slab_w), dtype),
                pltpu.SemaphoreType.DMA((MAX_RECTS,)),
            ],
        ),
        input_output_aliases={1: 0},      # image buffer backs the output (in place)
        compiler_params=pltpu.CompilerParams(
            dimension_semantics=("arbitrary",),
        ),
    )(rects, x3)
    return out3.reshape(B, C, H, W)


# --------------------------------------------------------------------------- #
# Fallback path: lane-dense streaming select (previous validated kernel,
# with the review's block-sizing / dtype fixes applied in the wrapper).
# --------------------------------------------------------------------------- #
def _select_kernel(keep_ref, img_ref, out_ref):
    keep = keep_ref[...] > 0.5
    out_ref[...] = jnp.where(keep, img_ref[...], jnp.asarray(FILL, img_ref.dtype))


def _cutout_streaming(img, keep):
    B, C, H, W = img.shape
    rows, lane = B * C, H * W
    x2d = img.reshape(rows, lane)                    # lane-dense slab
    keep2d = keep.reshape(1, lane)

    block_bytes, vmem_limit = _block_budget()
    block_elems = max(128, block_bytes // jnp.dtype(img.dtype).itemsize)
    unit = _sublane_unit(img.dtype)
    # Row tile first (rows = B*C is usually the small axis), then lane tile from
    # the per-block budget -> multi-MiB blocks with long unmasked store runs.
    rt = _pick_tile(rows, unit, 256)
    lt = _pick_tile(lane, 128, max(128, block_elems // rt))
    grid = (rows // rt, lane // lt)

    out2d = pl.pallas_call(
        _select_kernel,
        out_shape=jax.ShapeDtypeStruct((rows, lane), img.dtype),
        grid_spec=pltpu.PrefetchScalarGridSpec(
            num_scalar_prefetch=0,
            grid=grid,
            in_specs=[
                pl.BlockSpec((1, lt), lambda i, j: (0, j)),     # keep-mask row
                pl.BlockSpec((rt, lt), lambda i, j: (i, j)),    # image slab
            ],
            out_specs=pl.BlockSpec((rt, lt), lambda i, j: (i, j)),
        ),
        compiler_params=pltpu.CompilerParams(
            dimension_semantics=("parallel", "parallel"),
            vmem_limit_bytes=vmem_limit,
        ),
    )(keep2d, x2d)
    return out2d.reshape(B, C, H, W)


# --------------------------------------------------------------------------- #
# Public entry point
# --------------------------------------------------------------------------- #
def cutout(img, key):
    """img: (B, C, H, W). Random rectangles filled with FILL (torch Cutout semantics)."""
    _, _, H, W = img.shape
    active, y1, y2, x1, x2 = _sample_rects(key, H, W)
    try:
        out = _cutout_inplace(img, active, y1, y2, x1, x2)
        return jax.block_until_ready(out)
    except Exception:
        # Robust fallback: full streaming select (more HBM traffic, always lowers).
        keep = _keep_mask_from_rects(active, y1, y2, x1, x2, H, W)
        return _cutout_streaming(img, keep)


if __name__ == "__main__":
    key = jax.random.PRNGKey(0)
    k_img, k_cut = jax.random.split(key)

    B, C, H, W = 2, 4, 16, 16
    img = jax.random.normal(k_img, (B, C, H, W), dtype=jnp.float32)

    out = jax.block_until_ready(cutout(img, k_cut))

    # Pure-JAX reference: identical rectangle sampling, original mask blend.
    active, y1, y2, x1, x2 = _sample_rects(k_cut, H, W)
    keep = _keep_mask_from_rects(active, y1, y2, x1, x2, H, W)
    ref = img * keep + FILL * (1.0 - keep)

    assert out.shape == (B, C, H, W)
    assert jnp.allclose(out, ref, atol=1e-6), "mismatch vs reference"
    print("KERNEL_OK")
</pallas_src>

<mosaic_0001>
module attributes {stable_mosaic.version = 11 : i64} {
  func.func @_holes_kernel(%arg0: i32, %arg1: memref<32xi32, #tpu.memory_space<smem>>, %arg2: memref<8x16x16xf32, #tpu.memory_space<any>>, %arg3: memref<8x16x16xf32, #tpu.memory_space<any>>, %arg4: memref<8x8x4xf32, #tpu.memory_space<vmem>>, %arg5: memref<4x!tpu.dma_semaphore, #tpu.memory_space<semaphore_mem>>) attributes {dimension_semantics = [#tpu.dimension_semantics<arbitrary>], iteration_bounds = array<i64: 1>, scalar_prefetch = 0 : i64, scratch_operands = 2 : i64, tpu.core_type = #tpu.core_type<tc>, window_params = [{transform_indices = @transform_0, window_bounds = array<i64: 32>}, {}, {}]} {
    %c8_i32 = arith.constant 8 : i32
    %0 = arith.muli %arg0, %c8_i32 : i32
    %c0 = arith.constant 0 : index
    %1 = memref.load %arg1[%c0] : memref<32xi32, #tpu.memory_space<smem>>
    %c0_i32 = arith.constant 0 : i32
    %2 = arith.cmpi sgt, %1, %c0_i32 : i32
    %3 = arith.extui %2 : i1 to i32
    %c0_i32_0 = arith.constant 0 : i32
    %4 = arith.cmpi ne, %3, %c0_i32_0 : i32
    scf.if %4 {
      %c1 = arith.constant 1 : index
      %17 = memref.load %arg1[%c1] : memref<32xi32, #tpu.memory_space<smem>>
      %c2 = arith.constant 2 : index
      %18 = memref.load %arg1[%c2] : memref<32xi32, #tpu.memory_space<smem>>
      %c3 = arith.constant 3 : index
      %19 = memref.load %arg1[%c3] : memref<32xi32, #tpu.memory_space<smem>>
      %c4 = arith.constant 4 : index
      %20 = memref.load %arg1[%c4] : memref<32xi32, #tpu.memory_space<smem>>
      %c5 = arith.constant 5 : index
      %21 = memref.load %arg1[%c5] : memref<32xi32, #tpu.memory_space<smem>>
      %c6 = arith.constant 6 : index
      %22 = memref.load %arg1[%c6] : memref<32xi32, #tpu.memory_space<smem>>
      %c0_i32_7 = arith.constant 0 : i32
      %23 = tpu.memref_slice %arg3[%0, %21, %22] : memref<8x16x16xf32, #tpu.memory_space<any>> -> memref<8x8x4xf32, #tpu.memory_space<any>>
      %24 = tpu.memref_slice %arg5[%c0_i32_7] : memref<4x!tpu.dma_semaphore, #tpu.memory_space<semaphore_mem>> -> memref<1x!tpu.dma_semaphore, #tpu.memory_space<semaphore_mem>>
      %25 = tpu.memref_squeeze %24 : memref<1x!tpu.dma_semaphore, #tpu.memory_space<semaphore_mem>> -> memref<!tpu.dma_semaphore, #tpu.memory_space<semaphore_mem>>
      tpu.enqueue_dma source(%23 : memref<8x8x4xf32, #tpu.memory_space<any>>) target(%arg4 : memref<8x8x4xf32, #tpu.memory_space<vmem>>) target_semaphore(%25 : memref<!tpu.dma_semaphore, #tpu.memory_space<semaphore_mem>>)
      %c0_i32_8 = arith.constant 0 : i32
      %26 = tpu.memref_slice %arg3[%0, %21, %22] : memref<8x16x16xf32, #tpu.memory_space<any>> -> memref<8x8x4xf32, #tpu.memory_space<any>>
      %27 = tpu.memref_slice %arg5[%c0_i32_8] : memref<4x!tpu.dma_semaphore, #tpu.memory_space<semaphore_mem>> -> memref<1x!tpu.dma_semaphore, #tpu.memory_space<semaphore_mem>>
      %28 = tpu.memref_squeeze %27 : memref<1x!tpu.dma_semaphore, #tpu.memory_space<semaphore_mem>> -> memref<!tpu.dma_semaphore, #tpu.memory_space<semaphore_mem>>
      tpu.wait_dma2 semaphore(%28 : memref<!tpu.dma_semaphore, #tpu.memory_space<semaphore_mem>>) src(%26 : memref<8x8x4xf32, #tpu.memory_space<any>>) dst(%arg4 : memref<8x8x4xf32, #tpu.memory_space<vmem>>)
      %29 = tpu.iota {dimensions = array<i32: 0>} : vector<8x4xi32>
      %30 = vector.broadcast %21 : i32 to vector<8x4xi32>
      %31 = arith.addi %30, %29 : vector<8x4xi32>
      %32 = tpu.iota {dimensions = array<i32: 1>} : vector<8x4xi32>
      %33 = vector.broadcast %22 : i32 to vector<8x4xi32>
      %34 = arith.addi %33, %32 : vector<8x4xi32>
      %35 = vector.broadcast %17 : i32 to vector<8x4xi32>
      %36 = arith.cmpi sge, %31, %35 : vector<8x4xi32>
      %37 = vector.broadcast %18 : i32 to vector<8x4xi32>
      %38 = arith.cmpi slt, %31, %37 : vector<8x4xi32>
      %39 = arith.andi %36, %38 : vector<8x4xi1>
      %40 = vector.broadcast %19 : i32 to vector<8x4xi32>
      %41 = arith.cmpi sge, %34, %40 : vector<8x4xi32>
      %42 = arith.andi %39, %41 : vector<8x4xi1>
      %43 = vector.broadcast %20 : i32 to vector<8x4xi32>
      %44 = arith.cmpi slt, %34, %43 : vector<8x4xi32>
      %45 = arith.andi %42, %44 : vector<8x4xi1>
      %46 = vector.shape_cast %45 : vector<8x4xi1> to vector<1x8x4xi1>
      %c0_9 = arith.constant 0 : index
      %c0_10 = arith.constant 0 : index
      %c0_11 = arith.constant 0 : index
      %47 = vector.load %arg4[%c0_9, %c0_10, %c0_11] : memref<8x8x4xf32, #tpu.memory_space<vmem>>, vector<8x8x4xf32>
      %cst = arith.constant 0.000000e+00 : f32
      %48 = vector.shape_cast %46 : vector<1x8x4xi1> to vector<1x8x4xi1>
      %49 = vector.broadcast %48 : vector<1x8x4xi1> to vector<8x8x4xi1>
      %50 = vector.broadcast %cst : f32 to vector<8x8x4xf32>
      %51 = arith.select %49, %50, %47 : vector<8x8x4xi1>, vector<8x8x4xf32>
      %c0_12 = arith.constant 0 : index
      %c0_13 = arith.constant 0 : index
      %c0_14 = arith.constant 0 : index
      %52 = vector.load %arg4[%c0_12, %c0_13, %c0_14] : memref<8x8x4xf32, #tpu.memory_space<vmem>>, vector<8x8x4xf32>
      tpu.vector_store %arg4[%c0_12, %c0_13, %c0_14], %51 {strides = array<i32>} : memref<8x8x4xf32, #tpu.memory_space<vmem>>, vector<8x8x4xf32>,
      %c0_i32_15 = arith.constant 0 : i32
      %53 = tpu.memref_slice %arg3[%0, %21, %22] : memref<8x16x16xf32, #tpu.memory_space<any>> -> memref<8x8x4xf32, #tpu.memory_space<any>>
      %54 = tpu.memref_slice %arg5[%c0_i32_15] : memref<4x!tpu.dma_semaphore, #tpu.memory_space<semaphore_mem>> -> memref<1x!tpu.dma_semaphore, #tpu.memory_space<semaphore_mem>>
      %55 = tpu.memref_squeeze %54 : memref<1x!tpu.dma_semaphore, #tpu.memory_space<semaphore_mem>> -> memref<!tpu.dma_semaphore, #tpu.memory_space<semaphore_mem>>
      tpu.enqueue_dma source(%arg4 : memref<8x8x4xf32, #tpu.memory_space<vmem>>) target(%53 : memref<8x8x4xf32, #tpu.memory_space<any>>) target_semaphore(%55 : memref<!tpu.dma_semaphore, #tpu.memory_space<semaphore_mem>>)
      %c0_i32_16 = arith.constant 0 : i32
      %56 = tpu.memref_slice %arg3[%0, %21, %22] : memref<8x16x16xf32, #tpu.memory_space<any>> -> memref<8x8x4xf32, #tpu.memory_space<any>>
      %57 = tpu.memref_slice %arg5[%c0_i32_16] : memref<4x!tpu.dma_semaphore, #tpu.memory_space<semaphore_mem>> -> memref<1x!tpu.dma_semaphore, #tpu.memory_space<semaphore_mem>>
      %58 = tpu.memref_squeeze %57 : memref<1x!tpu.dma_semaphore, #tpu.memory_space<semaphore_mem>> -> memref<!tpu.dma_semaphore, #tpu.memory_space<semaphore_mem>>
      tpu.wait_dma2 semaphore(%58 : memref<!tpu.dma_semaphore, #tpu.memory_space<semaphore_mem>>) src(%arg4 : memref<8x8x4xf32, #tpu.memory_space<vmem>>) dst(%56 : memref<8x8x4xf32, #tpu.memory_space<any>>)
    } else {
    }
    %c8 = arith.constant 8 : index
    %5 = memref.load %arg1[%c8] : memref<32xi32, #tpu.memory_space<smem>>
    %c0_i32_1 = arith.constant 0 : i32
    %6 = arith.cmpi sgt, %5, %c0_i32_1 : i32
    %7 = arith.extui %6 : i1 to i32
    %c0_i32_2 = arith.constant 0 : i32
    %8 = arith.cmpi ne, %7, %c0_i32_2 : i32
    scf.if %8 {
      %c9 = arith.constant 9 : index
      %17 = memref.load %arg1[%c9] : memref<32xi32, #tpu.memory_space<smem>>
      %c10 = arith.constant 10 : index
      %18 = memref.load %arg1[%c10] : memref<32xi32, #tpu.memory_space<smem>>
      %c11 = arith.constant 11 : index
      %19 = memref.load %arg1[%c11] : memref<32xi32, #tpu.memory_space<smem>>
      %c12 = arith.constant 12 : index
      %20 = memref.load %arg1[%c12] : memref<32xi32, #tpu.memory_space<smem>>
      %c13 = arith.constant 13 : index
      %21 = memref.load %arg1[%c13] : memref<32xi32, #tpu.memory_space<smem>>
      %c14 = arith.constant 14 : index
      %22 = memref.load %arg1[%c14] : memref<32xi32, #tpu.memory_space<smem>>
      %c1_i32 = arith.constant 1 : i32
      %23 = tpu.memref_slice %arg3[%0, %21, %22] : memref<8x16x16xf32, #tpu.memory_space<any>> -> memref<8x8x4xf32, #tpu.memory_space<any>>
      %24 = tpu.memref_slice %arg5[%c1_i32] : memref<4x!tpu.dma_semaphore, #tpu.memory_space<semaphore_mem>> -> memref<1x!tpu.dma_semaphore, #tpu.memory_space<semaphore_mem>>
      %25 = tpu.memref_squeeze %24 : memref<1x!tpu.dma_semaphore, #tpu.memory_space<semaphore_mem>> -> memref<!tpu.dma_semaphore, #tpu.memory_space<semaphore_mem>>
      tpu.enqueue_dma source(%23 : memref<8x8x4xf32, #tpu.memory_space<any>>) target(%arg4 : memref<8x8x4xf32, #tpu.memory_space<vmem>>) target_semaphore(%25 : memref<!tpu.dma_semaphore, #tpu.memory_space<semaphore_mem>>)
      %c1_i32_7 = arith.constant 1 : i32
      %26 = tpu.memref_slice %arg3[%0, %21, %22] : memref<8x16x16xf32, #tpu.memory_space<any>> -> memref<8x8x4xf32, #tpu.memory_space<any>>
      %27 = tpu.memref_slice %arg5[%c1_i32_7] : memref<4x!tpu.dma_semaphore, #tpu.memory_space<semaphore_mem>> -> memref<1x!tpu.dma_semaphore, #tpu.memory_space<semaphore_mem>>
      %28 = tpu.memref_squeeze %27 : memref<1x!tpu.dma_semaphore, #tpu.memory_space<semaphore_mem>> -> memref<!tpu.dma_semaphore, #tpu.memory_space<semaphore_mem>>
      tpu.wait_dma2 semaphore(%28 : memref<!tpu.dma_semaphore, #tpu.memory_space<semaphore_mem>>) src(%26 : memref<8x8x4xf32, #tpu.memory_space<any>>) dst(%arg4 : memref<8x8x4xf32, #tpu.memory_space<vmem>>)
      %29 = tpu.iota {dimensions = array<i32: 0>} : vector<8x4xi32>
      %30 = vector.broadcast %21 : i32 to vector<8x4xi32>
      %31 = arith.addi %30, %29 : vector<8x4xi32>
      %32 = tpu.iota {dimensions = array<i32: 1>} : vector<8x4xi32>
      %33 = vector.broadcast %22 : i32 to vector<8x4xi32>
      %34 = arith.addi %33, %32 : vector<8x4xi32>
      %35 = vector.broadcast %17 : i32 to vector<8x4xi32>
      %36 = arith.cmpi sge, %31, %35 : vector<8x4xi32>
      %37 = vector.broadcast %18 : i32 to vector<8x4xi32>
      %38 = arith.cmpi slt, %31, %37 : vector<8x4xi32>
      %39 = arith.andi %36, %38 : vector<8x4xi1>
      %40 = vector.broadcast %19 : i32 to vector<8x4xi32>
      %41 = arith.cmpi sge, %34, %40 : vector<8x4xi32>
      %42 = arith.andi %39, %41 : vector<8x4xi1>
      %43 = vector.broadcast %20 : i32 to vector<8x4xi32>
      %44 = arith.cmpi slt, %34, %43 : vector<8x4xi32>
      %45 = arith.andi %42, %44 : vector<8x4xi1>
      %46 = vector.shape_cast %45 : vector<8x4xi1> to vector<1x8x4xi1>
      %c0_8 = arith.constant 0 : index
      %c0_9 = arith.constant 0 : index
      %c0_10 = arith.constant 0 : index
      %47 = vector.load %arg4[%c0_8, %c0_9, %c0_10] : memref<8x8x4xf32, #tpu.memory_space<vmem>>, vector<8x8x4xf32>
      %cst = arith.constant 0.000000e+00 : f32
      %48 = vector.shape_cast %46 : vector<1x8x4xi1> to vector<1x8x4xi1>
      %49 = vector.broadcast %48 : vector<1x8x4xi1> to vector<8x8x4xi1>
      %50 = vector.broadcast %cst : f32 to vector<8x8x4xf32>
      %51 = arith.select %49, %50, %47 : vector<8x8x4xi1>, vector<8x8x4xf32>
      %c0_11 = arith.constant 0 : index
      %c0_12 = arith.constant 0 : index
      %c0_13 = arith.constant 0 : index
      %52 = vector.load %arg4[%c0_11, %c0_12, %c0_13] : memref<8x8x4xf32, #tpu.memory_space<vmem>>, vector<8x8x4xf32>
      tpu.vector_store %arg4[%c0_11, %c0_12, %c0_13], %51 {strides = array<i32>} : memref<8x8x4xf32, #tpu.memory_space<vmem>>, vector<8x8x4xf32>,
      %c1_i32_14 = arith.constant 1 : i32
      %53 = tpu.memref_slice %arg3[%0, %21, %22] : memref<8x16x16xf32, #tpu.memory_space<any>> -> memref<8x8x4xf32, #tpu.memory_space<any>>
      %54 = tpu.memref_slice %arg5[%c1_i32_14] : memref<4x!tpu.dma_semaphore, #tpu.memory_space<semaphore_mem>> -> memref<1x!tpu.dma_semaphore, #tpu.memory_space<semaphore_mem>>
      %55 = tpu.memref_squeeze %54 : memref<1x!tpu.dma_semaphore, #tpu.memory_space<semaphore_mem>> -> memref<!tpu.dma_semaphore, #tpu.memory_space<semaphore_mem>>
      tpu.enqueue_dma source(%arg4 : memref<8x8x4xf32, #tpu.memory_space<vmem>>) target(%53 : memref<8x8x4xf32, #tpu.memory_space<any>>) target_semaphore(%55 : memref<!tpu.dma_semaphore, #tpu.memory_space<semaphore_mem>>)
      %c1_i32_15 = arith.constant 1 : i32
      %56 = tpu.memref_slice %arg3[%0, %21, %22] : memref<8x16x16xf32, #tpu.memory_space<any>> -> memref<8x8x4xf32, #tpu.memory_space<any>>
      %57 = tpu.memref_slice %arg5[%c1_i32_15] : memref<4x!tpu.dma_semaphore, #tpu.memory_space<semaphore_mem>> -> memref<1x!tpu.dma_semaphore, #tpu.memory_space<semaphore_mem>>
      %58 = tpu.memref_squeeze %57 : memref<1x!tpu.dma_semaphore, #tpu.memory_space<semaphore_mem>> -> memref<!tpu.dma_semaphore, #tpu.memory_space<semaphore_mem>>
      tpu.wait_dma2 semaphore(%58 : memref<!tpu.dma_semaphore, #tpu.memory_space<semaphore_mem>>) src(%arg4 : memref<8x8x4xf32, #tpu.memory_space<vmem>>) dst(%56 : memref<8x8x4xf32, #tpu.memory_space<any>>)
    } else {
    }
    %c16 = arith.constant 16 : index
    %9 = memref.load %arg1[%c16] : memref<32xi32, #tpu.memory_space<smem>>
    %c0_i32_3 = arith.constant 0 : i32
    %10 = arith.cmpi sgt, %9, %c0_i32_3 : i32
    %11 = arith.extui %10 : i1 to i32
    %c0_i32_4 = arith.constant 0 : i32
    %12 = arith.cmpi ne, %11, %c0_i32_4 : i32
    scf.if %12 {
      %c17 = arith.constant 17 : index
      %17 = memref.load %arg1[%c17] : memref<32xi32, #tpu.memory_space<smem>>
      %c18 = arith.constant 18 : index
      %18 = memref.load %arg1[%c18] : memref<32xi32, #tpu.memory_space<smem>>
      %c19 = arith.constant 19 : index
      %19 = memref.load %arg1[%c19] : memref<32xi32, #tpu.memory_space<smem>>
      %c20 = arith.constant 20 : index
      %20 = memref.load %arg1[%c20] : memref<32xi32, #tpu.memory_space<smem>>
      %c21 = arith.constant 21 : index
      %21 = memref.load %arg1[%c21] : memref<32xi32, #tpu.memory_space<smem>>
      %c22 = arith.constant 22 : index
      %22 = memref.load %arg1[%c22] : memref<32xi32, #tpu.memory_space<smem>>
      %c2_i32 = arith.constant 2 : i32
      %23 = tpu.memref_slice %arg3[%0, %21, %22] : memref<8x16x16xf32, #tpu.memory_space<any>> -> memref<8x8x4xf32, #tpu.memory_space<any>>
      %24 = tpu.memref_slice %arg5[%c2_i32] : memref<4x!tpu.dma_semaphore, #tpu.memory_space<semaphore_mem>> -> memref<1x!tpu.dma_semaphore, #tpu.memory_space<semaphore_mem>>
      %25 = tpu.memref_squeeze %24 : memref<1x!tpu.dma_semaphore, #tpu.memory_space<semaphore_mem>> -> memref<!tpu.dma_semaphore, #tpu.memory_space<semaphore_mem>>
      tpu.enqueue_dma source(%23 : memref<8x8x4xf32, #tpu.memory_space<any>>) target(%arg4 : memref<8x8x4xf32, #tpu.memory_space<vmem>>) target_semaphore(%25 : memref<!tpu.dma_semaphore, #tpu.memory_space<semaphore_mem>>)
      %c2_i32_7 = arith.constant 2 : i32
      %26 = tpu.memref_slice %arg3[%0, %21, %22] : memref<8x16x16xf32, #tpu.memory_space<any>> -> memref<8x8x4xf32, #tpu.memory_space<any>>
      %27 = tpu.memref_slice %arg5[%c2_i32_7] : memref<4x!tpu.dma_semaphore, #tpu.memory_space<semaphore_mem>> -> memref<1x!tpu.dma_semaphore, #tpu.memory_space<semaphore_mem>>
      %28 = tpu.memref_squeeze %27 : memref<1x!tpu.dma_semaphore, #tpu.memory_space<semaphore_mem>> -> memref<!tpu.dma_semaphore, #tpu.memory_space<semaphore_mem>>
      tpu.wait_dma2 semaphore(%28 : memref<!tpu.dma_semaphore, #tpu.memory_space<semaphore_mem>>) src(%26 : memref<8x8x4xf32, #tpu.memory_space<any>>) dst(%arg4 : memref<8x8x4xf32, #tpu.memory_space<vmem>>)
      %29 = tpu.iota {dimensions = array<i32: 0>} : vector<8x4xi32>
      %30 = vector.broadcast %21 : i32 to vector<8x4xi32>
      %31 = arith.addi %30, %29 : vector<8x4xi32>
      %32 = tpu.iota {dimensions = array<i32: 1>} : vector<8x4xi32>
      %33 = vector.broadcast %22 : i32 to vector<8x4xi32>
      %34 = arith.addi %33, %32 : vector<8x4xi32>
      %35 = vector.broadcast %17 : i32 to vector<8x4xi32>
      %36 = arith.cmpi sge, %31, %35 : vector<8x4xi32>
      %37 = vector.broadcast %18 : i32 to vector<8x4xi32>
      %38 = arith.cmpi slt, %31, %37 : vector<8x4xi32>
      %39 = arith.andi %36, %38 : vector<8x4xi1>
      %40 = vector.broadcast %19 : i32 to vector<8x4xi32>
      %41 = arith.cmpi sge, %34, %40 : vector<8x4xi32>
      %42 = arith.andi %39, %41 : vector<8x4xi1>
      %43 = vector.broadcast %20 : i32 to vector<8x4xi32>
      %44 = arith.cmpi slt, %34, %43 : vector<8x4xi32>
      %45 = arith.andi %42, %44 : vector<8x4xi1>
      %46 = vector.shape_cast %45 : vector<8x4xi1> to vector<1x8x4xi1>
      %c0_8 = arith.constant 0 : index
      %c0_9 = arith.constant 0 : index
      %c0_10 = arith.constant 0 : index
      %47 = vector.load %arg4[%c0_8, %c0_9, %c0_10] : memref<8x8x4xf32, #tpu.memory_space<vmem>>, vector<8x8x4xf32>
      %cst = arith.constant 0.000000e+00 : f32
      %48 = vector.shape_cast %46 : vector<1x8x4xi1> to vector<1x8x4xi1>
      %49 = vector.broadcast %48 : vector<1x8x4xi1> to vector<8x8x4xi1>
      %50 = vector.broadcast %cst : f32 to vector<8x8x4xf32>
      %51 = arith.select %49, %50, %47 : vector<8x8x4xi1>, vector<8x8x4xf32>
      %c0_11 = arith.constant 0 : index
      %c0_12 = arith.constant 0 : index
      %c0_13 = arith.constant 0 : index
      %52 = vector.load %arg4[%c0_11, %c0_12, %c0_13] : memref<8x8x4xf32, #tpu.memory_space<vmem>>, vector<8x8x4xf32>
      tpu.vector_store %arg4[%c0_11, %c0_12, %c0_13], %51 {strides = array<i32>} : memref<8x8x4xf32, #tpu.memory_space<vmem>>, vector<8x8x4xf32>,
      %c2_i32_14 = arith.constant 2 : i32
      %53 = tpu.memref_slice %arg3[%0, %21, %22] : memref<8x16x16xf32, #tpu.memory_space<any>> -> memref<8x8x4xf32, #tpu.memory_space<any>>
      %54 = tpu.memref_slice %arg5[%c2_i32_14] : memref<4x!tpu.dma_semaphore, #tpu.memory_space<semaphore_mem>> -> memref<1x!tpu.dma_semaphore, #tpu.memory_space<semaphore_mem>>
      %55 = tpu.memref_squeeze %54 : memref<1x!tpu.dma_semaphore, #tpu.memory_space<semaphore_mem>> -> memref<!tpu.dma_semaphore, #tpu.memory_space<semaphore_mem>>
      tpu.enqueue_dma source(%arg4 : memref<8x8x4xf32, #tpu.memory_space<vmem>>) target(%53 : memref<8x8x4xf32, #tpu.memory_space<any>>) target_semaphore(%55 : memref<!tpu.dma_semaphore, #tpu.memory_space<semaphore_mem>>)
      %c2_i32_15 = arith.constant 2 : i32
      %56 = tpu.memref_slice %arg3[%0, %21, %22] : memref<8x16x16xf32, #tpu.memory_space<any>> -> memref<8x8x4xf32, #tpu.memory_space<any>>
      %57 = tpu.memref_slice %arg5[%c2_i32_15] : memref<4x!tpu.dma_semaphore, #tpu.memory_space<semaphore_mem>> -> memref<1x!tpu.dma_semaphore, #tpu.memory_space<semaphore_mem>>
      %58 = tpu.memref_squeeze %57 : memref<1x!tpu.dma_semaphore, #tpu.memory_space<semaphore_mem>> -> memref<!tpu.dma_semaphore, #tpu.memory_space<semaphore_mem>>
      tpu.wait_dma2 semaphore(%58 : memref<!tpu.dma_semaphore, #tpu.memory_space<semaphore_mem>>) src(%arg4 : memref<8x8x4xf32, #tpu.memory_space<vmem>>) dst(%56 : memref<8x8x4xf32, #tpu.memory_space<any>>)
    } else {
    }
    %c24 = arith.constant 24 : index
    %13 = memref.load %arg1[%c24] : memref<32xi32, #tpu.memory_space<smem>>
    %c0_i32_5 = arith.constant 0 : i32
    %14 = arith.cmpi sgt, %13, %c0_i32_5 : i32
    %15 = arith.extui %14 : i1 to i32
    %c0_i32_6 = arith.constant 0 : i32
    %16 = arith.cmpi ne, %15, %c0_i32_6 : i32
    scf.if %16 {
      %c25 = arith.constant 25 : index
      %17 = memref.load %arg1[%c25] : memref<32xi32, #tpu.memory_space<smem>>
      %c26 = arith.constant 26 : index
      %18 = memref.load %arg1[%c26] : memref<32xi32, #tpu.memory_space<smem>>
      %c27 = arith.constant 27 : index
      %19 = memref.load %arg1[%c27] : memref<32xi32, #tpu.memory_space<smem>>
      %c28 = arith.constant 28 : index
      %20 = memref.load %arg1[%c28] : memref<32xi32, #tpu.memory_space<smem>>
      %c29 = arith.constant 29 : index
      %21 = memref.load %arg1[%c29] : memref<32xi32, #tpu.memory_space<smem>>
      %c30 = arith.constant 30 : index
      %22 = memref.load %arg1[%c30] : memref<32xi32, #tpu.memory_space<smem>>
      %c3_i32 = arith.constant 3 : i32
      %23 = tpu.memref_slice %arg3[%0, %21, %22] : memref<8x16x16xf32, #tpu.memory_space<any>> -> memref<8x8x4xf32, #tpu.memory_space<any>>
      %24 = tpu.memref_slice %arg5[%c3_i32] : memref<4x!tpu.dma_semaphore, #tpu.memory_space<semaphore_mem>> -> memref<1x!tpu.dma_semaphore, #tpu.memory_space<semaphore_mem>>
      %25 = tpu.memref_squeeze %24 : memref<1x!tpu.dma_semaphore, #tpu.memory_space<semaphore_mem>> -> memref<!tpu.dma_semaphore, #tpu.memory_space<semaphore_mem>>
      tpu.enqueue_dma source(%23 : memref<8x8x4xf32, #tpu.memory_space<any>>) target(%arg4 : memref<8x8x4xf32, #tpu.memory_space<vmem>>) target_semaphore(%25 : memref<!tpu.dma_semaphore, #tpu.memory_space<semaphore_mem>>)
      %c3_i32_7 = arith.constant 3 : i32
      %26 = tpu.memref_slice %arg3[%0, %21, %22] : memref<8x16x16xf32, #tpu.memory_space<any>> -> memref<8x8x4xf32, #tpu.memory_space<any>>
      %27 = tpu.memref_slice %arg5[%c3_i32_7] : memref<4x!tpu.dma_semaphore, #tpu.memory_space<semaphore_mem>> -> memref<1x!tpu.dma_semaphore, #tpu.memory_space<semaphore_mem>>
      %28 = tpu.memref_squeeze %27 : memref<1x!tpu.dma_semaphore, #tpu.memory_space<semaphore_mem>> -> memref<!tpu.dma_semaphore, #tpu.memory_space<semaphore_mem>>
      tpu.wait_dma2 semaphore(%28 : memref<!tpu.dma_semaphore, #tpu.memory_space<semaphore_mem>>) src(%26 : memref<8x8x4xf32, #tpu.memory_space<any>>) dst(%arg4 : memref<8x8x4xf32, #tpu.memory_space<vmem>>)
      %29 = tpu.iota {dimensions = array<i32: 0>} : vector<8x4xi32>
      %30 = vector.broadcast %21 : i32 to vector<8x4xi32>
      %31 = arith.addi %30, %29 : vector<8x4xi32>
      %32 = tpu.iota {dimensions = array<i32: 1>} : vector<8x4xi32>
      %33 = vector.broadcast %22 : i32 to vector<8x4xi32>
      %34 = arith.addi %33, %32 : vector<8x4xi32>
      %35 = vector.broadcast %17 : i32 to vector<8x4xi32>
      %36 = arith.cmpi sge, %31, %35 : vector<8x4xi32>
      %37 = vector.broadcast %18 : i32 to vector<8x4xi32>
      %38 = arith.cmpi slt, %31, %37 : vector<8x4xi32>
      %39 = arith.andi %36, %38 : vector<8x4xi1>
      %40 = vector.broadcast %19 : i32 to vector<8x4xi32>
      %41 = arith.cmpi sge, %34, %40 : vector<8x4xi32>
      %42 = arith.andi %39, %41 : vector<8x4xi1>
      %43 = vector.broadcast %20 : i32 to vector<8x4xi32>
      %44 = arith.cmpi slt, %34, %43 : vector<8x4xi32>
      %45 = arith.andi %42, %44 : vector<8x4xi1>
      %46 = vector.shape_cast %45 : vector<8x4xi1> to vector<1x8x4xi1>
      %c0_8 = arith.constant 0 : index
      %c0_9 = arith.constant 0 : index
      %c0_10 = arith.constant 0 : index
      %47 = vector.load %arg4[%c0_8, %c0_9, %c0_10] : memref<8x8x4xf32, #tpu.memory_space<vmem>>, vector<8x8x4xf32>
      %cst = arith.constant 0.000000e+00 : f32
      %48 = vector.shape_cast %46 : vector<1x8x4xi1> to vector<1x8x4xi1>
      %49 = vector.broadcast %48 : vector<1x8x4xi1> to vector<8x8x4xi1>
      %50 = vector.broadcast %cst : f32 to vector<8x8x4xf32>
      %51 = arith.select %49, %50, %47 : vector<8x8x4xi1>, vector<8x8x4xf32>
      %c0_11 = arith.constant 0 : index
      %c0_12 = arith.constant 0 : index
      %c0_13 = arith.constant 0 : index
      %52 = vector.load %arg4[%c0_11, %c0_12, %c0_13] : memref<8x8x4xf32, #tpu.memory_space<vmem>>, vector<8x8x4xf32>
      tpu.vector_store %arg4[%c0_11, %c0_12, %c0_13], %51 {strides = array<i32>} : memref<8x8x4xf32, #tpu.memory_space<vmem>>, vector<8x8x4xf32>,
      %c3_i32_14 = arith.constant 3 : i32
      %53 = tpu.memref_slice %arg3[%0, %21, %22] : memref<8x16x16xf32, #tpu.memory_space<any>> -> memref<8x8x4xf32, #tpu.memory_space<any>>
      %54 = tpu.memref_slice %arg5[%c3_i32_14] : memref<4x!tpu.dma_semaphore, #tpu.memory_space<semaphore_mem>> -> memref<1x!tpu.dma_semaphore, #tpu.memory_space<semaphore_mem>>
      %55 = tpu.memref_squeeze %54 : memref<1x!tpu.dma_semaphore, #tpu.memory_space<semaphore_mem>> -> memref<!tpu.dma_semaphore, #tpu.memory_space<semaphore_mem>>
      tpu.enqueue_dma source(%arg4 : memref<8x8x4xf32, #tpu.memory_space<vmem>>) target(%53 : memref<8x8x4xf32, #tpu.memory_space<any>>) target_semaphore(%55 : memref<!tpu.dma_semaphore, #tpu.memory_space<semaphore_mem>>)
      %c3_i32_15 = arith.constant 3 : i32
      %56 = tpu.memref_slice %arg3[%0, %21, %22] : memref<8x16x16xf32, #tpu.memory_space<any>> -> memref<8x8x4xf32, #tpu.memory_space<any>>
      %57 = tpu.memref_slice %arg5[%c3_i32_15] : memref<4x!tpu.dma_semaphore, #tpu.memory_space<semaphore_mem>> -> memref<1x!tpu.dma_semaphore, #tpu.memory_space<semaphore_mem>>
      %58 = tpu.memref_squeeze %57 : memref<1x!tpu.dma_semaphore, #tpu.memory_space<semaphore_mem>> -> memref<!tpu.dma_semaphore, #tpu.memory_space<semaphore_mem>>
      tpu.wait_dma2 semaphore(%58 : memref<!tpu.dma_semaphore, #tpu.memory_space<semaphore_mem>>) src(%arg4 : memref<8x8x4xf32, #tpu.memory_space<vmem>>) dst(%56 : memref<8x8x4xf32, #tpu.memory_space<any>>)
    } else {
    }
    return
  }
  func.func @transform_0(%arg0: i32) -> i32 {
    %c0_i32 = arith.constant 0 : i32
    %c0_i32_0 = arith.constant 0 : i32
    return %c0_i32 : i32
  }
}

module attributes {stable_mosaic.version = 11 : i64} {
  func.func @_select_kernel(%arg0: i32, %arg1: i32, %arg2: memref<1x256xf32, #tpu.memory_space<vmem>>, %arg3: memref<8x256xf32, #tpu.memory_space<vmem>>, %arg4: memref<8x256xf32, #tpu.memory_space<vmem>>) attributes {dimension_semantics = [#tpu.dimension_semantics<parallel>, #tpu.dimension_semantics<parallel>], iteration_bounds = array<i64: 1, 1>, scalar_prefetch = 0 : i64, scratch_operands = 0 : i64, tpu.core_type = #tpu.core_type<tc>, window_params = [{transform_indices = @transform_0, window_bounds = array<i64: 1, 256>}, {transform_indices = @transform_1, window_bounds = array<i64: 8, 256>}, {transform_indices = @transform_2, window_bounds = array<i64: 8, 256>}]} {
    %c0 = arith.constant 0 : index
    %c0_0 = arith.constant 0 : index
    %0 = vector.load %arg2[%c0, %c0_0] : memref<1x256xf32, #tpu.memory_space<vmem>>, vector<1x256xf32>
    %cst = arith.constant 5.000000e-01 : f32
    %1 = vector.broadcast %cst : f32 to vector<1x256xf32>
    %2 = arith.cmpf ogt, %0, %1 : vector<1x256xf32>
    %c0_1 = arith.constant 0 : index
    %c0_2 = arith.constant 0 : index
    %3 = vector.load %arg3[%c0_1, %c0_2] : memref<8x256xf32, #tpu.memory_space<vmem>>, vector<8x256xf32>
    %cst_3 = arith.constant 0.000000e+00 : f32
    %4 = vector.shape_cast %2 : vector<1x256xi1> to vector<1x256xi1>
    %5 = vector.broadcast %4 : vector<1x256xi1> to vector<8x256xi1>
    %6 = vector.broadcast %cst_3 : f32 to vector<8x256xf32>
    %7 = arith.select %5, %3, %6 : vector<8x256xi1>, vector<8x256xf32>
    %c0_4 = arith.constant 0 : index
    %c0_5 = arith.constant 0 : index
    %8 = vector.load %arg4[%c0_4, %c0_5] : memref<8x256xf32, #tpu.memory_space<vmem>>, vector<8x256xf32>
    tpu.vector_store %arg4[%c0_4, %c0_5], %7 {strides = array<i32>} : memref<8x256xf32, #tpu.memory_space<vmem>>, vector<8x256xf32>,
    return
  }
  func.func @transform_0(%arg0: i32, %arg1: i32) -> (i32, i32) {
    %c0_i32 = arith.constant 0 : i32
    %c0_i32_0 = arith.constant 0 : i32
    return %c0_i32, %arg1 : i32, i32
  }
  func.func @transform_1(%arg0: i32, %arg1: i32) -> (i32, i32) {
    %c0_i32 = arith.constant 0 : i32
    return %arg0, %arg1 : i32, i32
  }
  func.func @transform_2(%arg0: i32, %arg1: i32) -> (i32, i32) {
    %c0_i32 = arith.constant 0 : i32
    return %arg0, %arg1 : i32, i32
  }
}

</mosaic_0001>

<bundles_post_ra>
// kernel: tpu_custom_call.1
= control target key start
LH: loop header
LB: loop body
LE: loop exit
PB: predicated region body
PF: predicated region fallthrough
CT: control target
= control target key end

     0   :  { %7 = vsyncpa [#allocation3], 0  ;;  %s169_s0 = inlined_call_operand.hbm [shape: f32[1,256], index: 0, kind: input, shape index: {}]   ;;  %s170_s1 = inlined_call_operand.hbm [shape: f32[8,256], index: 1, kind: input, shape index: {}]   ;;  %s171_s2 = inlined_call_operand.hbm [shape: f32[8,256], index: 2, kind: output, shape index: {}]  }
   0x1   :  { %8 = vsyncpa [#allocation6], 0 }
   0x2   :  { %9 = vsyncpa [#allocation4], 0  ;;  %s141_s9 = smov [#allocation2]   ;;  %s142_s11 = smov [#allocation5]  }
   0x3   :  { %s16_s10 = sshll.u32 %s141_s9, 4  ;;  %s26_s12 = sshll.u32 %s142_s11, 4  ;;  %s17_s10 = int_to_ptr.vmem [resolvable:$true] %s16_s10  ;;  %s27_s12 = int_to_ptr.vmem [resolvable:$true] %s26_s12 }
   0x4   :  { %s83_s13 = scalar_lea.vmem %s17_s10, 32  ;;  %p88_p1 = scmp.lt.s32.totalorder %s17_s10, %s17_s10 }
   0x5   :  { %p84_p0 = scmp.ne.s32.totalorder %s17_s10, %s83_s13  ;;  %p89_p2 = scmp.lt.s32.totalorder %s83_s13, %s83_s13 }
   0x7   :  { %p90_p3 = por %p89_p2, %p88_p1 }
   0x9   :  { %p91_p4 = pnand %p90_p3, %p84_p0 }
   0xb   :  { %94 = shalt.err (!%p91_p4)
}
   0xc   :  { %19 = dma.hbm_to_vmem [thread:$0]  %s169_s0, 32, %s17_s10, [#allocation3]  }
   0xd   :  { %s103_s16 = scalar_lea.vmem %s27_s12, 256  ;;  %p108_p6 = scmp.lt.s32.totalorder %s27_s12, %s27_s12 }
   0xe   :  { %p104_p5 = scmp.ne.s32.totalorder %s27_s12, %s103_s16  ;;  %p109_p7 = scmp.lt.s32.totalorder %s103_s16, %s103_s16 }
  0x10   :  { %p110_p8 = por %p109_p7, %p108_p6 }
  0x12   :  { %p111_p9 = pnand %p110_p8, %p104_p5 }
  0x14   :  { %114 = shalt.err (!%p111_p9)
}
  0x15   :  { %29 = dma.hbm_to_vmem [thread:$0]  %s170_s1, 256, %s27_s12, [#allocation6]  }
  0x16   :  { %135 = dma.done.wait [#allocation3], 32  }
  0x17   :  { %136 = vsyncadd [#allocation3], 4294967264 }
  0x18   :  { %137 = dma.done.wait [#allocation6], 256  }
  0x19   :  { %138 = vsyncadd [#allocation6], 4294967040  ;;  %v41_v0 = vlaneseq  ;;  %v36_v4 = vld [vmem:[#allocation2] sm:$0x3]  ;;  %v143_v5 = vmov 0   ;;  %s144_s0 = smov [#allocation7]  }
  0x1a   :  { %vm37_vm0 = vcmp.gt.f32.partialorder %v36_v4, 0.5  ;;  %s61_s19 = sshll.u32 %s144_s0, 4  ;;  %v38_v7 = vld [vmem:[#allocation5] sm:$0xff]  ;;  %v39_v9 = vld [vmem:[#allocation5 + $0x8] sm:$0xff]  ;;  %s62_s19 = int_to_ptr.vmem [resolvable:$true] %s61_s19 }
  0x1b   :  { %v42_v1 = vshrl.u32 %v41_v0, 7  ;;  %v40_v6 = vsel %vm37_vm0, 1, %v143_v5  ;;  %s115_s1 = scalar_lea.vmem %s62_s19, 256  ;;  %p120_p11 = scmp.lt.s32.totalorder %s62_s19, %s62_s19 }
  0x1c   :  { %p116_p10 = scmp.ne.s32.totalorder %s62_s19, %s115_s1  ;;  %p121_p12 = scmp.lt.s32.totalorder %s115_s1, %s115_s1 }
  0x1d   :  { %v43_v2 = vsub.s32 0, %v42_v1  ;;  %v47_v3 = vsub.s32 1, %v42_v1 }
  0x1e   :  { %p122_p13 = por %p121_p12, %p120_p11 }
  0x1f   :  { %v44_v8 = vrot.slane %v40_v6, %v43_v2  ;;  %v48_v10 = vrot.slane %v40_v6, %v47_v3 }
  0x20   :  { %p123_p0 = pnand %p122_p13, %p116_p10 }
  0x21   :  { %vm49_vm1 = vcmp.eq.s32.totalorder %v44_v8, 1  ;;  %vm50_vm2 = vcmp.eq.s32.totalorder %v48_v10, 1 }
  0x22   :  { %v51_v11 = vsel %vm49_vm1, %v38_v7, 0.0  ;;  %v52_v12 = vsel %vm50_vm2, %v39_v9, 0.0 }
  0x23   :  { %53 = vst [vmem:[#allocation7] sm:$0xff] %v51_v11  ;;  %54 = vst [vmem:[#allocation7 + $0x8] sm:$0xff] %v52_v12 }
  0x24   :  { %126 = shalt.err (!%p123_p0)
}
  0x25   :  { %64 = dma.vmem_to_hbm [thread:$0]  %s62_s19, 256, %s171_s2, [#allocation4]  }
  0x26   :  { %139 = dma.done.wait [#allocation4], 256  }
  0x27   :  { %140 = vsyncadd [#allocation4], 4294967040 }
  0x28   :  { %68 = vsyncpa [#allocation3], 1 }
  0x29   :  { %69 = vsyncpa [#allocation6], 1 }
  0x2a   :  { %70 = vsyncpa [#allocation4], 1 }

</bundles_post_ra>
